<compile_context>
chip_gen: v7x
topology: tpu7x:2x2x1
jax: 0.10.0
libtpu: 0.0.40
codegen_flags: <defaults>
</compile_context>

<pallas_src>
import functools

import jax
import jax.numpy as jnp
from jax.experimental import pallas as pl
from jax.experimental.pallas import tpu as pltpu

LANES = 128
SUBLANES = 8
MAX_TILE_ROWS = 4096                 # 4096*128*4 B = 2 MiB per f32 input block
ERR_CACHE_BUDGET_BYTES = 24 << 20    # VMEM budget for the phase-0 err cache
VMEM_LIMIT_BYTES = 48 << 20          # cache (24) + 2 in x 2 bufs x 2 MiB (8) + slack


def _berhu_kernel(pred_ref, gt_ref, loss_ref,
                  acc_max, acc_sum, acc_cnt, c_smem, *maybe_cache,
                  tile_rows, total_rows, delta, ragged, use_cache):
    err_cache = maybe_cache[0] if use_cache else None
    p = pl.program_id(0)          # 0: max/count pass, 1: berhu-sum pass
    i = pl.program_id(1)          # row-block index
    nblk = pl.num_programs(1)
    groups = tile_rows // SUBLANES

    @pl.when(jnp.logical_and(p == 0, i == 0))
    def _init():
        # err >= 0, so 0 is a safe identity for the masked max.
        acc_max[...] = jnp.zeros_like(acc_max)
        acc_sum[...] = jnp.zeros_like(acc_sum)
        acc_cnt[...] = jnp.zeros_like(acc_cnt)

    def compute_err_valid():
        pred = pred_ref[...].astype(jnp.float32)
        gt = gt_ref[...].astype(jnp.float32)
        valid = gt > 0.0
        if ragged:
            # Only emitted when the last block actually hangs past the array;
            # masks the garbage rows Pallas reads beyond the boundary.
            row = i * tile_rows + jax.lax.broadcasted_iota(
                jnp.int32, (tile_rows, LANES), 0)
            valid = jnp.logical_and(valid, row < total_rows)
        err = jnp.abs(pred - gt)
        return err, valid

    @pl.when(p == 0)
    def _pass0():
        err, valid = compute_err_valid()
        m = jnp.where(valid, err, 0.0)
        acc_max[...] = jnp.maximum(
            acc_max[...], jnp.max(m.reshape(groups, SUBLANES, LANES), axis=0))
        cnt = valid.astype(jnp.float32)
        acc_cnt[...] += jnp.sum(cnt.reshape(groups, SUBLANES, LANES), axis=0)
        if use_cache:
            start = pl.multiple_of(i * tile_rows, tile_rows)
            # err >= 0 for valid elements; -1.0 marks invalid in the cache.
            err_cache[pl.ds(start, tile_rows), :] = jnp.where(valid, err, -1.0)

    @pl.when(jnp.logical_and(p == 1, i == 0))
    def _compute_c():
        # Single cross-lane/sublane reduce of the whole first pass.
        c = delta * jnp.max(acc_max[...])
        c_smem[0] = c
        c_smem[1] = 0.5 / c        # inv_2c (inf when c == 0; never selected)
        c_smem[2] = 0.5 * c        # half_c

    @pl.when(p == 1)
    def _pass1():
        c = c_smem[0]
        inv_2c = c_smem[1]
        half_c = c_smem[2]
        if use_cache:
            start = pl.multiple_of(i * tile_rows, tile_rows)
            cached = err_cache[pl.ds(start, tile_rows), :]
            valid = cached >= 0.0
            err = cached
        else:
            err, valid = compute_err_valid()
        sq = err * err * inv_2c + half_c      # == (err^2 + c^2) / (2c)
        # Keep the select (NOT a multiply-by-mask): when c == 0 the sq branch
        # is inf/NaN but jnp.where never lets it leak.
        term = jnp.where(err > c, sq, err)
        term = jnp.where(valid, term, 0.0)
        acc_sum[...] += jnp.sum(term.reshape(groups, SUBLANES, LANES), axis=0)

    @pl.when(jnp.logical_and(p == 1, i == nblk - 1))
    def _finalize():
        total = jnp.sum(acc_sum[...], keepdims=True)   # (1, 1)
        count = jnp.sum(acc_cnt[...], keepdims=True)   # (1, 1)
        loss_ref[...] = total / count                  # NaN if mask empty (matches ref)


def berhu_loss(prediction, gt, delta=0.05, epoch=0, *,
               max_tile_rows=MAX_TILE_ROWS, use_err_cache=None):
    """Pallas TPU forward of FusionNet.Berhu_loss.

    prediction: (B, C, H, W) — only channel 0 is used.
    gt:         (B, 1, H, W) (broadcastable against prediction[:, 0:1]).
    """
    del epoch  # unused by the loss, kept for signature parity
    depth = prediction[:, 0:1]                       # native dtype kept
    depth, gt = jnp.broadcast_arrays(depth, gt)

    pred_flat = depth.reshape(-1)
    gt_flat = gt.reshape(-1)
    n = pred_flat.shape[0]

    # Round up to a multiple of one (8,128) vreg so rows is sublane-aligned.
    # Pad <= 1023 elems; gt pads with 0 so padding is masked out. XLA fuses
    # this with the channel-slice copy it already has to do.
    block_elems = SUBLANES * LANES
    pad = (-n) % block_elems
    if pad:
        pred_flat = jnp.pad(pred_flat, (0, pad))
        gt_flat = jnp.pad(gt_flat, (0, pad))
    rows = (n + pad) // LANES                        # multiple of 8

    pred2d = pred_flat.reshape(rows, LANES)
    gt2d = gt_flat.reshape(rows, LANES)

    if rows <= max_tile_rows:
        tile_rows = rows                             # single full block
    else:
        tile_rows = max(SUBLANES, (max_tile_rows // SUBLANES) * SUBLANES)
    nblk = pl.cdiv(rows, tile_rows)
    ragged = (rows % tile_rows) != 0

    cache_rows = nblk * tile_rows
    cache_bytes = cache_rows * LANES * 4
    if use_err_cache is None:
        # nblk == 1: inputs already stay resident in VMEM, no cache needed.
        use_cache = (nblk > 1) and (cache_bytes <= ERR_CACHE_BUDGET_BYTES)
    else:
        use_cache = bool(use_err_cache)

    kernel = functools.partial(
        _berhu_kernel, tile_rows=tile_rows, total_rows=rows,
        delta=float(delta), ragged=ragged, use_cache=use_cache)

    if use_cache:
        # Phase 1 reads only the VMEM err cache; collapse the input block
        # index to 0 so Pallas issues no phase-1 input DMAs.
        in_map = lambda p, i: (i * (1 - p), 0)
    else:
        in_map = lambda p, i: (i, 0)
    in_spec = pl.BlockSpec((tile_rows, LANES), in_map)
    out_spec = pl.BlockSpec((1, 1), lambda p, i: (0, 0))

    scratch = [
        pltpu.VMEM((SUBLANES, LANES), jnp.float32),  # running max(err)
        pltpu.VMEM((SUBLANES, LANES), jnp.float32),  # running berhu-term sum
        pltpu.VMEM((SUBLANES, LANES), jnp.float32),  # running mask count
        pltpu.SMEM((3,), jnp.float32),               # c, 0.5/c, 0.5*c
    ]
    if use_cache:
        scratch.append(pltpu.VMEM((cache_rows, LANES), jnp.float32))

    loss = pl.pallas_call(
        kernel,
        out_shape=jax.ShapeDtypeStruct((1, 1), jnp.float32),
        grid_spec=pltpu.PrefetchScalarGridSpec(
            num_scalar_prefetch=0,
            grid=(2, nblk),
            in_specs=[in_spec, in_spec],
            out_specs=out_spec,
            scratch_shapes=scratch,
        ),
        compiler_params=pltpu.CompilerParams(
            # Phase 1 depends on phase 0's accumulators and the block axis
            # accumulates into scratch, so both axes stay sequential.
            dimension_semantics=("arbitrary", "arbitrary"),
            vmem_limit_bytes=VMEM_LIMIT_BYTES,
        ),
    )(pred2d, gt2d)

    return loss[0, 0]


def _reference(prediction, gt, delta=0.05):
    pred = prediction[:, 0:1].astype(jnp.float32)
    gt = gt.astype(jnp.float32)
    err = jnp.abs(pred - gt)
    mask = gt > 0
    c = delta * jnp.max(jnp.where(mask, err, 0.0))
    sq = (err * err + c * c) / (2.0 * c)
    term = jnp.where(err > c, sq, err)
    return jnp.sum(jnp.where(mask, term, 0.0)) / jnp.sum(mask)


if __name__ == "__main__":
    key = jax.random.PRNGKey(0)

    # Case 1: small module-consistent shapes; single block, no cache path.
    k1, k2, k3, k4 = jax.random.split(key, 4)
    B, C, H, W = 2, 4, 16, 16
    prediction = jax.random.normal(k1, (B, C, H, W), dtype=jnp.float32)
    gt = jax.random.normal(k2, (B, 1, H, W), dtype=jnp.float32)
    loss = berhu_loss(prediction, gt)
    jax.block_until_ready(loss)
    ref = _reference(prediction, gt)
    assert jnp.allclose(loss, ref, rtol=1e-5, atol=1e-6), (loss, ref)

    # Case 2: force multi-block + ragged last block + VMEM err-cache path.
    pred2 = jax.random.normal(k3, (2, 4, 32, 40), dtype=jnp.float32)
    gt2 = jax.random.normal(k4, (2, 1, 32, 40), dtype=jnp.float32)
    loss2 = berhu_loss(pred2, gt2, max_tile_rows=16)
    jax.block_until_ready(loss2)
    ref2 = _reference(pred2, gt2)
    assert jnp.allclose(loss2, ref2, rtol=1e-5, atol=1e-6), (loss2, ref2)

    # Case 3: same shapes, streaming fallback (cache disabled), ragged blocks.
    loss3 = berhu_loss(pred2, gt2, max_tile_rows=16, use_err_cache=False)
    jax.block_until_ready(loss3)
    assert jnp.allclose(loss3, ref2, rtol=1e-5, atol=1e-6), (loss3, ref2)

    print("KERNEL_OK")
</pallas_src>

<mosaic_0001>
module attributes {stable_mosaic.version = 11 : i64} {
  func.func @_berhu_kernel(%arg0: i32, %arg1: i32, %arg2: memref<8x128xf32, #tpu.memory_space<vmem>>, %arg3: memref<8x128xf32, #tpu.memory_space<vmem>>, %arg4: memref<1x1xf32, #tpu.memory_space<vmem>>, %arg5: memref<8x128xf32, #tpu.memory_space<vmem>>, %arg6: memref<8x128xf32, #tpu.memory_space<vmem>>, %arg7: memref<8x128xf32, #tpu.memory_space<vmem>>, %arg8: memref<3xf32, #tpu.memory_space<smem>>) attributes {dimension_semantics = [#tpu.dimension_semantics<arbitrary>, #tpu.dimension_semantics<arbitrary>], iteration_bounds = array<i64: 2, 1>, scalar_prefetch = 0 : i64, scratch_operands = 4 : i64, tpu.core_type = #tpu.core_type<tc>, window_params = [{transform_indices = @transform_0, window_bounds = array<i64: 8, 128>}, {transform_indices = @transform_1, window_bounds = array<i64: 8, 128>}, {pipeline_mode = #tpu.pipeline_mode<synchronous>, transform_indices = @transform_2, window_bounds = array<i64: 1, 1>}]} {
    %c0_i32 = arith.constant 0 : i32
    %0 = arith.cmpi eq, %arg0, %c0_i32 : i32
    %c0_i32_0 = arith.constant 0 : i32
    %1 = arith.cmpi eq, %arg1, %c0_i32_0 : i32
    %2 = arith.andi %0, %1 : i1
    %3 = arith.extui %2 : i1 to i32
    %c0_i32_1 = arith.constant 0 : i32
    %4 = arith.cmpi ne, %3, %c0_i32_1 : i32
    scf.if %4 {
      %cst = arith.constant 0.000000e+00 : f32
      %21 = vector.broadcast %cst : f32 to vector<8x128xf32>
      %c0 = arith.constant 0 : index
      %c0_11 = arith.constant 0 : index
      %22 = vector.load %arg5[%c0, %c0_11] : memref<8x128xf32, #tpu.memory_space<vmem>>, vector<8x128xf32>
      tpu.vector_store %arg5[%c0, %c0_11], %21 {strides = array<i32>} : memref<8x128xf32, #tpu.memory_space<vmem>>, vector<8x128xf32>,
      %cst_12 = arith.constant 0.000000e+00 : f32
      %23 = vector.broadcast %cst_12 : f32 to vector<8x128xf32>
      %c0_13 = arith.constant 0 : index
      %c0_14 = arith.constant 0 : index
      %24 = vector.load %arg6[%c0_13, %c0_14] : memref<8x128xf32, #tpu.memory_space<vmem>>, vector<8x128xf32>
      tpu.vector_store %arg6[%c0_13, %c0_14], %23 {strides = array<i32>} : memref<8x128xf32, #tpu.memory_space<vmem>>, vector<8x128xf32>,
      %cst_15 = arith.constant 0.000000e+00 : f32
      %25 = vector.broadcast %cst_15 : f32 to vector<8x128xf32>
      %c0_16 = arith.constant 0 : index
      %c0_17 = arith.constant 0 : index
      %26 = vector.load %arg7[%c0_16, %c0_17] : memref<8x128xf32, #tpu.memory_space<vmem>>, vector<8x128xf32>
      tpu.vector_store %arg7[%c0_16, %c0_17], %25 {strides = array<i32>} : memref<8x128xf32, #tpu.memory_space<vmem>>, vector<8x128xf32>,
    } else {
    }
    %c0_i32_2 = arith.constant 0 : i32
    %5 = arith.cmpi eq, %arg0, %c0_i32_2 : i32
    %6 = arith.extui %5 : i1 to i32
    %c0_i32_3 = arith.constant 0 : i32
    %7 = arith.cmpi ne, %6, %c0_i32_3 : i32
    scf.if %7 {
      %c0 = arith.constant 0 : index
      %c0_11 = arith.constant 0 : index
      %21 = vector.load %arg2[%c0, %c0_11] : memref<8x128xf32, #tpu.memory_space<vmem>>, vector<8x128xf32>
      %c0_12 = arith.constant 0 : index
      %c0_13 = arith.constant 0 : index
      %22 = vector.load %arg3[%c0_12, %c0_13] : memref<8x128xf32, #tpu.memory_space<vmem>>, vector<8x128xf32>
      %cst = arith.constant 0.000000e+00 : f32
      %23 = vector.broadcast %cst : f32 to vector<8x128xf32>
      %24 = arith.cmpf ogt, %22, %23 : vector<8x128xf32>
      %25 = arith.subf %21, %22 : vector<8x128xf32>
      %26 = math.absf %25 : vector<8x128xf32>
      %cst_14 = arith.constant 0.000000e+00 : f32
      %27 = vector.broadcast %cst_14 : f32 to vector<8x128xf32>
      %28 = arith.select %24, %26, %27 : vector<8x128xi1>, vector<8x128xf32>
      %c0_15 = arith.constant 0 : index
      %c0_16 = arith.constant 0 : index
      %29 = vector.load %arg5[%c0_15, %c0_16] : memref<8x128xf32, #tpu.memory_space<vmem>>, vector<8x128xf32>
      %30 = vector.shape_cast %28 : vector<8x128xf32> to vector<1x8x128xf32>
      %cst_17 = arith.constant dense<0xFF800000> : vector<8x128xf32>
      %31 = vector.multi_reduction <maximumf>, %30, %cst_17 [0] : vector<1x8x128xf32> to vector<8x128xf32>
      %32 = arith.maximumf %29, %31 : vector<8x128xf32>
      %c0_18 = arith.constant 0 : index
      %c0_19 = arith.constant 0 : index
      %33 = vector.load %arg5[%c0_18, %c0_19] : memref<8x128xf32, #tpu.memory_space<vmem>>, vector<8x128xf32>
      tpu.vector_store %arg5[%c0_18, %c0_19], %32 {strides = array<i32>} : memref<8x128xf32, #tpu.memory_space<vmem>>, vector<8x128xf32>,
      %34 = arith.extui %24 : vector<8x128xi1> to vector<8x128xi32>
      %35 = arith.sitofp %34 : vector<8x128xi32> to vector<8x128xf32>
      %c0_20 = arith.constant 0 : index
      %c0_21 = arith.constant 0 : index
      %36 = vector.load %arg7[%c0_20, %c0_21] : memref<8x128xf32, #tpu.memory_space<vmem>>, vector<8x128xf32>
      %37 = vector.shape_cast %35 : vector<8x128xf32> to vector<1x8x128xf32>
      %cst_22 = arith.constant dense<0.000000e+00> : vector<8x128xf32>
      %38 = vector.multi_reduction <add>, %37, %cst_22 [0] : vector<1x8x128xf32> to vector<8x128xf32>
      %39 = arith.addf %36, %38 : vector<8x128xf32>
      %c0_23 = arith.constant 0 : index
      %c0_24 = arith.constant 0 : index
      %40 = vector.load %arg7[%c0_23, %c0_24] : memref<8x128xf32, #tpu.memory_space<vmem>>, vector<8x128xf32>
      tpu.vector_store %arg7[%c0_23, %c0_24], %39 {strides = array<i32>} : memref<8x128xf32, #tpu.memory_space<vmem>>, vector<8x128xf32>,
    } else {
    }
    %c1_i32 = arith.constant 1 : i32
    %8 = arith.cmpi eq, %arg0, %c1_i32 : i32
    %c0_i32_4 = arith.constant 0 : i32
    %9 = arith.cmpi eq, %arg1, %c0_i32_4 : i32
    %10 = arith.andi %8, %9 : i1
    %11 = arith.extui %10 : i1 to i32
    %c0_i32_5 = arith.constant 0 : i32
    %12 = arith.cmpi ne, %11, %c0_i32_5 : i32
    scf.if %12 {
      %c0 = arith.constant 0 : index
      %c0_11 = arith.constant 0 : index
      %21 = vector.load %arg5[%c0, %c0_11] : memref<8x128xf32, #tpu.memory_space<vmem>>, vector<8x128xf32>
      %22 = vector.shape_cast %21 : vector<8x128xf32> to vector<1x8x128xf32>
      %cst = arith.constant dense<0xFF800000> : vector<1xf32>
      %23 = vector.multi_reduction <maximumf>, %22, %cst [1, 2] : vector<1x8x128xf32> to vector<1xf32>
      %24 = vector.shape_cast %23 : vector<1xf32> to vector<1x1x1xf32>
      %25 = vector.extract %24[0, 0, 0] : f32 from vector<1x1x1xf32>
      %cst_12 = arith.constant 5.000000e-02 : f32
      %26 = arith.mulf %cst_12, %25 : f32
      %c0_13 = arith.constant 0 : index
      %27 = memref.load %arg8[%c0_13] : memref<3xf32, #tpu.memory_space<smem>>
      memref.store %26, %arg8[%c0_13] : memref<3xf32, #tpu.memory_space<smem>>
      %cst_14 = arith.constant 5.000000e-01 : f32
      %28 = arith.divf %cst_14, %26 : f32
      %c1 = arith.constant 1 : index
      %29 = memref.load %arg8[%c1] : memref<3xf32, #tpu.memory_space<smem>>
      memref.store %28, %arg8[%c1] : memref<3xf32, #tpu.memory_space<smem>>
      %cst_15 = arith.constant 5.000000e-01 : f32
      %30 = arith.mulf %cst_15, %26 : f32
      %c2 = arith.constant 2 : index
      %31 = memref.load %arg8[%c2] : memref<3xf32, #tpu.memory_space<smem>>
      memref.store %30, %arg8[%c2] : memref<3xf32, #tpu.memory_space<smem>>
    } else {
    }
    %c1_i32_6 = arith.constant 1 : i32
    %13 = arith.cmpi eq, %arg0, %c1_i32_6 : i32
    %14 = arith.extui %13 : i1 to i32
    %c0_i32_7 = arith.constant 0 : i32
    %15 = arith.cmpi ne, %14, %c0_i32_7 : i32
    scf.if %15 {
      %c0 = arith.constant 0 : index
      %21 = memref.load %arg8[%c0] : memref<3xf32, #tpu.memory_space<smem>>
      %c1 = arith.constant 1 : index
      %22 = memref.load %arg8[%c1] : memref<3xf32, #tpu.memory_space<smem>>
      %c2 = arith.constant 2 : index
      %23 = memref.load %arg8[%c2] : memref<3xf32, #tpu.memory_space<smem>>
      %c0_11 = arith.constant 0 : index
      %c0_12 = arith.constant 0 : index
      %24 = vector.load %arg2[%c0_11, %c0_12] : memref<8x128xf32, #tpu.memory_space<vmem>>, vector<8x128xf32>
      %c0_13 = arith.constant 0 : index
      %c0_14 = arith.constant 0 : index
      %25 = vector.load %arg3[%c0_13, %c0_14] : memref<8x128xf32, #tpu.memory_space<vmem>>, vector<8x128xf32>
      %cst = arith.constant 0.000000e+00 : f32
      %26 = vector.broadcast %cst : f32 to vector<8x128xf32>
      %27 = arith.cmpf ogt, %25, %26 : vector<8x128xf32>
      %28 = arith.subf %24, %25 : vector<8x128xf32>
      %29 = math.absf %28 : vector<8x128xf32>
      %30 = arith.mulf %29, %29 : vector<8x128xf32>
      %31 = vector.broadcast %22 : f32 to vector<8x128xf32>
      %32 = arith.mulf %30, %31 : vector<8x128xf32>
      %33 = vector.broadcast %23 : f32 to vector<8x128xf32>
      %34 = arith.addf %32, %33 : vector<8x128xf32>
      %35 = vector.broadcast %21 : f32 to vector<8x128xf32>
      %36 = arith.cmpf ogt, %29, %35 : vector<8x128xf32>
      %37 = arith.select %36, %34, %29 : vector<8x128xi1>, vector<8x128xf32>
      %cst_15 = arith.constant 0.000000e+00 : f32
      %38 = vector.broadcast %cst_15 : f32 to vector<8x128xf32>
      %39 = arith.select %27, %37, %38 : vector<8x128xi1>, vector<8x128xf32>
      %c0_16 = arith.constant 0 : index
      %c0_17 = arith.constant 0 : index
      %40 = vector.load %arg6[%c0_16, %c0_17] : memref<8x128xf32, #tpu.memory_space<vmem>>, vector<8x128xf32>
      %41 = vector.shape_cast %39 : vector<8x128xf32> to vector<1x8x128xf32>
      %cst_18 = arith.constant dense<0.000000e+00> : vector<8x128xf32>
      %42 = vector.multi_reduction <add>, %41, %cst_18 [0] : vector<1x8x128xf32> to vector<8x128xf32>
      %43 = arith.addf %40, %42 : vector<8x128xf32>
      %c0_19 = arith.constant 0 : index
      %c0_20 = arith.constant 0 : index
      %44 = vector.load %arg6[%c0_19, %c0_20] : memref<8x128xf32, #tpu.memory_space<vmem>>, vector<8x128xf32>
      tpu.vector_store %arg6[%c0_19, %c0_20], %43 {strides = array<i32>} : memref<8x128xf32, #tpu.memory_space<vmem>>, vector<8x128xf32>,
    } else {
    }
    %c1_i32_8 = arith.constant 1 : i32
    %16 = arith.cmpi eq, %arg0, %c1_i32_8 : i32
    %c0_i32_9 = arith.constant 0 : i32
    %17 = arith.cmpi eq, %arg1, %c0_i32_9 : i32
    %18 = arith.andi %16, %17 : i1
    %19 = arith.extui %18 : i1 to i32
    %c0_i32_10 = arith.constant 0 : i32
    %20 = arith.cmpi ne, %19, %c0_i32_10 : i32
    scf.if %20 {
      %c0 = arith.constant 0 : index
      %c0_11 = arith.constant 0 : index
      %21 = vector.load %arg6[%c0, %c0_11] : memref<8x128xf32, #tpu.memory_space<vmem>>, vector<8x128xf32>
      %22 = vector.shape_cast %21 : vector<8x128xf32> to vector<1x8x128xf32>
      %cst = arith.constant dense<0.000000e+00> : vector<1xf32>
      %23 = vector.multi_reduction <add>, %22, %cst [1, 2] : vector<1x8x128xf32> to vector<1xf32>
      %24 = vector.shape_cast %23 : vector<1xf32> to vector<1x1x1xf32>
      %25 = vector.extract %24[0, 0, 0] : f32 from vector<1x1x1xf32>
      %26 = vector.broadcast %25 : f32 to vector<1x1xf32>
      %c0_12 = arith.constant 0 : index
      %c0_13 = arith.constant 0 : index
      %27 = vector.load %arg7[%c0_12, %c0_13] : memref<8x128xf32, #tpu.memory_space<vmem>>, vector<8x128xf32>
      %28 = vector.shape_cast %27 : vector<8x128xf32> to vector<1x8x128xf32>
      %cst_14 = arith.constant dense<0.000000e+00> : vector<1xf32>
      %29 = vector.multi_reduction <add>, %28, %cst_14 [1, 2] : vector<1x8x128xf32> to vector<1xf32>
      %30 = vector.shape_cast %29 : vector<1xf32> to vector<1x1x1xf32>
      %31 = vector.extract %30[0, 0, 0] : f32 from vector<1x1x1xf32>
      %32 = vector.broadcast %31 : f32 to vector<1x1xf32>
      %33 = arith.divf %26, %32 : vector<1x1xf32>
      %c0_15 = arith.constant 0 : index
      %c0_16 = arith.constant 0 : index
      %34 = vector.load %arg4[%c0_15, %c0_16] : memref<1x1xf32, #tpu.memory_space<vmem>>, vector<1x1xf32>
      tpu.vector_store %arg4[%c0_15, %c0_16], %33 {strides = array<i32>} : memref<1x1xf32, #tpu.memory_space<vmem>>, vector<1x1xf32>,
    } else {
    }
    return
  }
  func.func @transform_0(%arg0: i32, %arg1: i32) -> (i32, i32) {
    %c0_i32 = arith.constant 0 : i32
    %c0_i32_0 = arith.constant 0 : i32
    return %arg1, %c0_i32 : i32, i32
  }
  func.func @transform_1(%arg0: i32, %arg1: i32) -> (i32, i32) {
    %c0_i32 = arith.constant 0 : i32
    %c0_i32_0 = arith.constant 0 : i32
    return %arg1, %c0_i32 : i32, i32
  }
  func.func @transform_2(%arg0: i32, %arg1: i32) -> (i32, i32) {
    %c0_i32 = arith.constant 0 : i32
    %c0_i32_0 = arith.constant 0 : i32
    %c0_i32_1 = arith.constant 0 : i32
    return %c0_i32, %c0_i32_0 : i32, i32
  }
}

</mosaic_0001>

<bundles_post_ra>
// kernel: tpu_custom_call.1
= control target key start
LH: loop header
LB: loop body
LE: loop exit
PB: predicated region body
PF: predicated region fallthrough
CT: control target
= control target key end

     0   :  { %7 = vsyncpa [#allocation7], 0  ;;  %s704_s0 = inlined_call_operand.hbm [shape: f32[8,128], index: 0, kind: input, shape index: {}]   ;;  %s705_s1 = inlined_call_operand.hbm [shape: f32[8,128], index: 1, kind: input, shape index: {}]   ;;  %s706_s2 = inlined_call_operand.hbm [shape: f32[1,1], index: 2, kind: output, shape index: {}]  }
   0x1   :  { %8 = vsyncpa [#allocation10], 0 }
   0x2   :  { %9 = vsyncpa [#allocation8], 0  ;;  %s561_s9 = smov 0   ;;  %s563_s10 = smov 0  }
   0x3   :  { %s565_s11 = smov 0  }
   0x4 LB: > { %s337_s12 = sadd.s32 4294967295, %s539_s11   ;;  %s27_s13 = sadd.s32 1, %s535_s10  ;;  %s539_s11 = sphi %s565_s11, %s15_s11   ;;  %s535_s10 = sphi %s563_s10, %s717_s10   ;;  %s531_s9 = sphi %s561_s9, %s716_s9  }
   0x5   : > { %p29_p0 = scmp.ge.s32.totalorder %s27_s13, 2  ;;  %p338_p1 = scmp.ge.s32.totalorder %s539_s11, 1 }
   0x6   : > { %p105_p2 = scmp.lt.s32.totalorder %s539_s11, 3  ;;  %p588_p4 = scmp.eq.s32.totalorder %s337_s12, 0 }
   0x7   : > { %s719_s13 = smov (%p29_p0, %s27_s13), 0  ;;  %s541_s16 = smov [#allocation6]  }
   0x8   : > { %p582_p3 = pnand %p338_p1, %p105_p2  ;;  %s120_s17 = sshll.u32 %s541_s16, 4  ;;  %s121_s17 = int_to_ptr.vmem [resolvable:$true] %s120_s17 }
   0x9   : > { %s711_s15 = scalar_select %p588_p4, 1, 0 }
   0xa   : > { %s710_s14 = scalar_select %p582_p3, 1, 0 }
   0xb   : > { %p377_p5 = pneg %p582_p3  ;;  %s542_s18 = smov [#allocation9]  }
   0xc   : > { %s133_s19 = sshll.u32 %s542_s18, 4  ;;  %s423_s23 = scalar_lea.hbm %s704_s0, 128  ;;  %s600_s19 = int_to_ptr.vmem [resolvable:$true] %s133_s19 }
   0xd   : > { %p596_p6 = pnand %p588_p4, %p377_p5  ;;  %p424_p7 = scmp.ne.s32.totalorder %s704_s0, %s423_s23 }
   0xe   : > { %p430_p11 = scmp.lt.u32.totalorder %s423_s23, %s704_s0 }
   0xf   : > { %p425_p8 = pneg %p596_p6 }
  0x11   : > { %p426_p9 = pnand %p425_p8, %p424_p7 }
  0x13   : > { %p427_p10 = pneg %p426_p9 }
  0x15   : > { %p432_p12 = pnand %p430_p11, %p427_p10 }
  0x17   : > { %435 = shalt.err (!%p432_p12)
}
  0x18   : > { %s436_s28 = scalar_lea.vmem %s121_s17, 128  ;;  %p444_p2 = scmp.lt.s32.totalorder %s121_s17, %s121_s17 }
  0x19   : > { %p437_p13 = scmp.ne.s32.totalorder %s121_s17, %s436_s28  ;;  %p445_p5 = scmp.lt.s32.totalorder %s436_s28, %s436_s28 }
  0x1b   : > { %p439_p0 = pnand %p437_p13, %p425_p8  ;;  %p446_p4 = por %p445_p5, %p444_p2 }
  0x1d   : > { %p440_p1 = pneg %p439_p0 }
  0x1f   : > { %p447_p3 = pnand %p446_p4, %p440_p1 }
  0x21   : > { %450 = shalt.err (!%p447_p3)
}
  0x22   : > { %380 = dma.hbm_to_vmem [thread:$0]  (!%p596_p6), %s704_s0, 128, %s121_s17, [#allocation7]  }
  0x23   : > { %s451_s5 = scalar_lea.hbm %s705_s1, 128 }
  0x24   : > { %p452_p7 = scmp.ne.s32.totalorder %s705_s1, %s451_s5  ;;  %p458_p3 = scmp.lt.u32.totalorder %s451_s5, %s705_s1 }
  0x26   : > { %p454_p9 = pnand %p452_p7, %p425_p8 }
  0x28   : > { %p455_p4 = pneg %p454_p9 }
  0x2a   : > { %p460_p10 = pnand %p458_p3, %p455_p4 }
  0x2c   : > { %463 = shalt.err (!%p460_p10)
}
  0x2d   : > { %s464_s17 = scalar_lea.vmem %s600_s19, 128  ;;  %p472_p0 = scmp.lt.s32.totalorder %s600_s19, %s600_s19 }
  0x2e   : > { %p465_p11 = scmp.ne.s32.totalorder %s600_s19, %s464_s17  ;;  %p473_p1 = scmp.lt.s32.totalorder %s464_s17, %s464_s17 }
  0x30   : > { %p467_p12 = pnand %p465_p11, %p425_p8  ;;  %p474_p2 = por %p473_p1, %p472_p0 }
  0x32   : > { %p468_p13 = pneg %p467_p12 }
  0x34   : > { %p475_p5 = pnand %p474_p2, %p468_p13 }
  0x36   : > { %478 = shalt.err (!%p475_p5)
}
  0x37   : > { %383 = dma.hbm_to_vmem [thread:$0]  (!%p596_p6), %s705_s1, 128, %s600_s19, [#allocation10]  }
  0x38   : > { %p713_p7 = scmp.ne.s32.totalorder %s710_s14, 0 }
  0x39   : > { %p714_p9 = scmp.ne.s32.totalorder (!%p713_p7), %s711_s15, 0 }
  0x3a   : > { %146 = sbr.rel (%p713_p7) target bundleno = 637 (0x27d), region = 28 }
  0x41   : > { %518 = dma.done.wait (%p714_p9), [#allocation7], 128  }
  0x42   : > { %520 = vsyncadd (%p714_p9), [#allocation7], 4294967168 }
  0x43   : > { %522 = dma.done.wait (%p714_p9), [#allocation10], 128  }
  0x44   : > { %524 = vsyncadd (%p714_p9), [#allocation10], 4294967168  ;;  %p162_p8 = scmp.eq.s32.totalorder %s531_s9, 0 }
  0x45   : > { %v543_v0 = vmov (%p162_p8), 0.0  }
  0x46   : > { %167 = sbr.rel (!%p162_p8) target bundleno = 77 (0x4d), region = 40  ;;  %168 = vst [vmem:[#allocation2] sm:$0xff] (%p162_p8), %v543_v0  ;;  %169 = vst [vmem:[#allocation3] sm:$0xff] (%p162_p8), %v543_v0 }
  0x47   : > { %170 = vst [vmem:[#allocation4] sm:$0xff] (%p162_p8), %v543_v0 }
  0x4d PF: > { %p345_p6 = scmp.ne.s32.totalorder %s531_s9, 0 }
  0x4e   : > { %v174_v1 = vld [vmem:[#allocation6] sm:$0xff] (!%p345_p6)  ;;  %v175_v2 = vld [vmem:[#allocation9] sm:$0xff] (!%p345_p6)  ;;  %v185_v4 = vld [vmem:[#allocation4] sm:$0xff] (!%p345_p6)  ;;  %v544_v5 = vmov (!%p345_p6), 0.0  }
  0x4f   : > { %173 = sbr.rel (%p345_p6) target bundleno = 87 (0x57), region = 44  ;;  %vm176_vm0 = vcmp.gt.f32.partialorder (!%p345_p6), %v175_v2, 0.0  ;;  %v177_v3 = vsub.f32 (!%p345_p6), %v174_v1, %v175_v2  ;;  %v180_v8 = vld [vmem:[#allocation2] sm:$0xff] (!%p345_p6) }
  0x50   : > { %v346_v6 = vsel (!%p345_p6), %vm176_vm0, 1.0, %v544_v5 }
  0x51   : > { %v178_v7 = vand.u32 (!%p345_p6), 2147483647, %v177_v3  ;;  %v187_v9 = vadd.f32 (!%p345_p6), %v346_v6, %v185_v4 }
  0x53   : > { %v179_v10 = vsel (!%p345_p6), %vm176_vm0, %v178_v7, 0.0  ;;  %188 = vst [vmem:[#allocation4] sm:$0xff] (!%p345_p6), %v187_v9 }
  0x54   : > { %v181_v11 = vmax.f32 (!%p345_p6), %v180_v8, %v179_v10 }
  0x56   : > { %182 = vst [vmem:[#allocation2] sm:$0xff] %v181_v11 }
  0x57 PF: > { %p189_p4 = scmp.eq.s32.totalorder %s531_s9, 1 }
  0x59   : > { %193 = sbr.rel (!%p189_p4) target bundleno = 365 (0x16d), region = 48 }
  0x5d   : > { %v194_v12 = vld [vmem:[#allocation2] sm:$0xff] (%p189_p4) }
  0x5e   : > { %195 = vmax.xlane.f32.xlu0 (%p189_p4), %v194_v12 }
  0xeb   : > { %v196_v13 = vpop.xlane.xlu0 %195 }
  0xec   : > { %v197_v14 = vrot.slane %v196_v13, 4 }
  0xee   : > { %v198_v15 = vmax.f32 %v196_v13, %v197_v14 }
  0xf0   : > { %v199_v16 = vrot.slane %v198_v15, 2 }
  0xf2   : > { %v200_v17 = vmax.f32 %v198_v15, %v199_v16 }
  0xf4   : > { %v201_v18 = vrot.slane %v200_v17, 1 }
  0xf6   : > { %v202_v19 = vmax.f32 %v200_v17, %v201_v18 }
  0xf8   : > { %357 = vpush %v202_v19 }
 0x129   : > { %s358_s14 = spop %357 }
 0x12a   : > { %s204_s15 = smul.f32 0.05, %s358_s14 }
 0x12c   : > { %206 = sst [smem:[#allocation5]] %s204_s15  ;;  %v207_v20 = vstv %s204_s15  ;;  %s213_s19 = smul.f32 0.5, %s204_s15 }
 0x12d   : > { %419 = vrcp.f32 %v207_v20 }
 0x12e   : > { %215 = sst [smem:[#allocation5 + $0x2]] %s213_s19 }
 0x137   : > { %v420_v21 = vpop.eup %419 }
 0x138   : > { %359 = vpush %v420_v21 }
 0x169   : > { %s360_s20 = spop %359 }
 0x16a   : > { %s210_s22 = smul.f32 0.5, %s360_s20 }
 0x16c   : > { %212 = sst [smem:[#allocation5 + $0x1]] %s210_s22 }
 0x16d PF: > { %p348_p3 = scmp.ne.s32.totalorder %s531_s9, 1 }
 0x16e   : > { %s219_s23 = sld [smem:[#allocation5]] (!%p348_p3)  ;;  %s349_s24 = sld [smem:[#allocation5 + $0x1]] (!%p348_p3)  ;;  %v222_v22 = vld [vmem:[#allocation6] sm:$0xff] (!%p348_p3)  ;;  %v223_v23 = vld [vmem:[#allocation9] sm:$0xff] (!%p348_p3)  ;;  %v236_v32 = vld [vmem:[#allocation3] sm:$0xff] (!%p348_p3) }
 0x16f   : > { %218 = sbr.rel (%p348_p3) target bundleno = 382 (0x17e), region = 52  ;;  %s350_s25 = sld [smem:[#allocation5 + $0x2]] (!%p348_p3)  ;;  %v225_v24 = vsub.f32 (!%p348_p3), %v222_v22, %v223_v23  ;;  %vm224_vm2 = vcmp.gt.f32.partialorder (!%p348_p3), %v223_v23, 0.0 }
 0x171   : > { %v226_v25 = vand.u32 (!%p348_p3), 2147483647, %v225_v24 }
 0x173   : > { %v227_v26 = vmul.f32 (!%p348_p3), %v226_v25, %v226_v25 }
 0x174   : > { %v228_v27 = vstv (!%p348_p3), %s349_s24  ;;  %v232_v28 = vstv (!%p348_p3), %s219_s23 }
 0x175   : > { %v229_v29 = vmul.f32 (!%p348_p3), %v228_v27, %v227_v26  ;;  %v230_v30 = vstv (!%p348_p3), %s350_s25  ;;  %vm233_vm1 = vcmp.gt.f32.partialorder (!%p348_p3), %v226_v25, %v232_v28 }
 0x177   : > { %v231_v31 = vadd.f32 %v230_v30, %v229_v29 }
 0x179   : > { %v234_v33 = vsel %vm233_vm1, %v231_v31, %v226_v25 }
 0x17a   : > { %v235_v34 = vsel %vm224_vm2, %v234_v33, 0.0 }
 0x17b   : > { %v238_v35 = vadd.f32 %v236_v32, %v235_v34 }
 0x17d   : > { %239 = vst [vmem:[#allocation3] sm:$0xff] %v238_v35 }
 0x17e PF: > { %241 = sbr.rel (!%p189_p4) target bundleno = 612 (0x264), region = 56  ;;  %v253_v37 = vld [vmem:[#allocation4] sm:$0xff] (%p189_p4)  ;;  %vm266_vm3 = vcmask (%p189_p4), 0  }
 0x184   : > { %v242_v36 = vld [vmem:[#allocation3] sm:$0xff] (%p189_p4) }
 0x185   : > { %243 = vadd.xlane.f32.xlu0 %v242_v36 }
 0x189   : > { %254 = vadd.xlane.f32.xlu0 %v253_v37 }
 0x212   : > { %v244_v38 = vpop.xlane.xlu0 %243 }
 0x213   : > { %v245_v39 = vrot.slane %v244_v38, 4 }
 0x215   : > { %v246_v40 = vadd.f32 %v245_v39, %v244_v38 }
 0x216   : > { %v255_v41 = vpop.xlane.xlu0 %254 }
 0x217   : > { %v247_v42 = vrot.slane %v246_v40, 2  ;;  %v256_v43 = vrot.slane %v255_v41, 4 }
 0x219   : > { %v257_v44 = vadd.f32 %v256_v43, %v255_v41  ;;  %v248_v45 = vadd.f32 %v247_v42, %v246_v40 }
 0x21b   : > { %v258_v46 = vrot.slane %v257_v44, 2  ;;  %v249_v47 = vrot.slane %v248_v45, 1 }
 0x21d   : > { %v259_v48 = vadd.f32 %v258_v46, %v257_v44  ;;  %v250_v49 = vadd.f32 %v249_v47, %v248_v45 }
 0x21f   : > { %361 = vpush %v250_v49  ;;  %v260_v50 = vrot.slane %v259_v48, 1 }
 0x221   : > { %v261_v51 = vadd.f32 %v260_v50, %v259_v48 }
 0x223   : > { %363 = vpush %v261_v51 }
 0x250   : > { %s362_s9 = spop %361 }
 0x251   : > { %v252_v54 = vstv %s362_s9 }
 0x254   : > { %s364_s26 = spop %363 }
 0x255   : > { %v263_v52 = vstv %s364_s26 }
 0x256   : > { %421 = vrcp.f32 %v263_v52 }
 0x260   : > { %v422_v53 = vpop.eup %421 }
 0x261   : > { %v265_v55 = vmul.f32 %v422_v53, %v252_v54 }
 0x263   : > { %267 = vst.msk [vmem:[#allocation11] sm:$0x1] %vm266_vm3, %v265_v55 }
 0x264 PF: > { %p669_p10 = scmp.eq.s32.totalorder %s337_s12, 1  ;;  %s545_s28 = smov [#allocation11]  }
 0x265   : > { %s275_s29 = sshll.u32 %s545_s28, 4  ;;  %s276_s29 = int_to_ptr.vmem [resolvable:$true] %s275_s29 }
 0x266   : > { %s479_s30 = scalar_lea.vmem %s276_s29, 16  ;;  %s485_s3 = scalar_lea.vmem %s276_s29, 32 }
 0x267   : > { %p480_p11 = scmp.ne.s32.totalorder %s276_s29, %s479_s30  ;;  %p486_p0 = scmp.lt.s32.totalorder %s276_s29, %s276_s29 }
 0x268   : > { %p487_p1 = scmp.lt.s32.totalorder %s485_s3, %s479_s30 }
 0x269   : > { %p481_p12 = pnand %p480_p11, %p669_p10 }
 0x26a   : > { %p488_p2 = por %p487_p1, %p486_p0 }
 0x26b   : > { %p482_p13 = pneg %p481_p12 }
 0x26d   : > { %p489_p5 = pnand %p488_p2, %p482_p13 }
 0x26f   : > { %492 = shalt.err (!%p489_p5)
}
 0x270   : > { %s493_s5 = scalar_lea.hbm %s706_s2, 16 }
 0x271   : > { %p494_p7 = scmp.ne.s32.totalorder %s706_s2, %s493_s5  ;;  %p499_p6 = scmp.lt.u32.totalorder %s493_s5, %s706_s2 }
 0x273   : > { %p495_p9 = pnand %p494_p7, %p669_p10 }
 0x275   : > { %p496_p8 = pneg %p495_p9 }
 0x277   : > { %p501_p4 = pnand %p499_p6, %p496_p8 }
 0x279   : > { %504 = shalt.err (!%p501_p4)
}
 0x27a   : > { %374 = dma.vmem_to_hbm [thread:$0]  (%p669_p10), %s276_s29, 16, %s706_s2, [#allocation8]  }
 0x27b   : > { %526 = dma.done.wait (%p669_p10), [#allocation8], 16  }
 0x27c   : > { %528 = vsyncadd (%p669_p10), [#allocation8], 4294967280 }
 0x27d PF: > { %s15_s11 = sadd.s32 1, %s539_s11   ;;  %s716_s9 = smov %s535_s10 }
 0x27e   : > { %p12_p3 = scmp.ge.s32.totalorder %s15_s11, 4   ;;  %s717_s10 = smov %s719_s13 }
 0x280   :  { %14 = sbr.rel (!%p12_p3) target bundleno = 4 (0x4), region = 86 }
 0x287   :  { %288 = vsyncpa [#allocation7], 1 }
 0x288   :  { %290 = vsyncpa [#allocation7 + $0x1], 1 }
 0x289   :  { %291 = vsyncpa [#allocation10], 1 }
 0x28a   :  { %292 = vsyncpa [#allocation8], 1 }
 0x28b   :  { %294 = vsyncpa [#allocation8 + $0x1], 1 }

</bundles_post_ra>
